<compile_context>
chip_gen: v5e
topology: v5e:2x2
jax: 0.10.0
libtpu: 0.0.40
codegen_flags: <defaults>
</compile_context>

<pallas_src>
import jax
import jax.numpy as jnp
from jax.experimental import pallas as pl
from jax.experimental.pallas import tpu as pltpu


def _round_up(x, m):
    return ((x + m - 1) // m) * m


def _make_fused_mlp_kernel(n_linear, activation):
    """Kernel body: x_ref, (w0, b0, w1, b1, ...), o_ref."""

    def kernel(*refs):
        x_ref = refs[0]
        o_ref = refs[-1]
        wb = refs[1:-1]
        assert len(wb) == 2 * n_linear

        y = x_ref[...]                  # f32 activations
        for i in range(n_linear):
            w = wb[2 * i][...]          # (Din_pad, Dout_pad) bf16, padded rows/cols = 0
            b = wb[2 * i + 1][...]      # (1, Dout_pad) f32, padded lanes = 0
            # Single bf16 MXU pass, f32 accumulation.
            y = jnp.dot(y.astype(w.dtype), w, preferred_element_type=jnp.float32)
            y = y + b                   # VALU — free under MXU/launch bound
            if i != n_linear - 1:
                if activation == "sigmoid":
                    y = jax.nn.sigmoid(y)     # EUP
                elif activation == "tanh":
                    y = jnp.tanh(y)           # EUP
                elif activation == "relu":
                    y = jnp.maximum(y, 0.0)   # VALU
                # activation is None -> pure Linear stack
        o_ref[...] = y.astype(o_ref.dtype)

    return kernel


def fused_mlp_forward(x, padded_weights, padded_biases, activation):
    """Run the whole MLP in one pallas_call.

    x:               (B, Din) unpadded input (f32)
    padded_weights:  list of (din_pad, dout_pad) bf16, zero-padded
    padded_biases:   list of (1, dout_pad) f32, zero-padded
    Returns the padded output (B_pad, Dout_pad); caller slices if needed.
    """
    n_linear = len(padded_weights)
    B, Din = x.shape
    Din_pad = padded_weights[0].shape[0]
    Dout_pad = padded_weights[-1].shape[1]
    all_dims_pad = [padded_weights[0].shape[0]] + [w.shape[1] for w in padded_weights]

    # --- batch tiling -------------------------------------------------------
    # >=2 grid steps once B_pad >= 16 (feeds both TCs on v7x via "parallel"),
    # but cap the tile at 512 rows so single-core v5e/v6e take few, large
    # steps (amortizes the ~0.35 µs per-grid-step overhead).
    B_pad8 = _round_up(B, 8)
    if B_pad8 <= 8:
        TB = B_pad8
    else:
        TB = min(512, _round_up(pl.cdiv(B_pad8, 2), 8))
    B_pad = _round_up(B_pad8, TB)
    grid = (B_pad // TB,)

    # --- input padding (only materialize when actually needed) --------------
    if (B_pad != B) or (Din_pad != Din):
        x_in = jnp.zeros((B_pad, Din_pad), dtype=x.dtype).at[:B, :Din].set(x)
    else:
        x_in = x

    # --- VMEM budget ---------------------------------------------------------
    weight_bytes = sum(int(w.size) * w.dtype.itemsize for w in padded_weights)
    bias_bytes = sum(int(b.size) * b.dtype.itemsize for b in padded_biases)
    x_tile_bytes = TB * Din_pad * 4 * 2          # double-buffered input tile
    out_tile_bytes = TB * Dout_pad * 4 * 2       # double-buffered output tile
    act_bytes = TB * max(all_dims_pad) * 4 * 3   # live intermediates headroom

    # --- cost estimate (documents the roofline, helps XLA scheduling) -------
    flops = 2 * B_pad * sum(w.shape[0] * w.shape[1] for w in padded_weights)
    if activation in ("sigmoid", "tanh") and n_linear > 1:
        transcendentals = B_pad * sum(w.shape[1] for w in padded_weights[:-1])
    else:
        transcendentals = 0
    bytes_accessed = (x_in.size * x_in.dtype.itemsize + weight_bytes + bias_bytes
                      + B_pad * Dout_pad * 4)
    cost = pl.CostEstimate(flops=flops, transcendentals=transcendentals,
                           bytes_accessed=bytes_accessed)

    kernel = _make_fused_mlp_kernel(n_linear, activation)
    out_shape = jax.ShapeDtypeStruct((B_pad, Dout_pad), x.dtype)
    out_spec = pl.BlockSpec((TB, Dout_pad), lambda i: (i, 0))

    def _run(single_buffer_weights):
        nbuf = 1 if single_buffer_weights else 2
        needed = (x_tile_bytes + out_tile_bytes + act_bytes
                  + nbuf * (weight_bytes + bias_bytes))
        vmem_limit = int(min(max(needed * 1.25 + (1 << 20), 4 << 20), 64 << 20))

        in_specs = [pl.BlockSpec((TB, Din_pad), lambda i: (i, 0))]
        operands = [x_in]
        for w, b in zip(padded_weights, padded_biases):
            if single_buffer_weights:
                # Constant index_map -> single-buffer to halve weight VMEM.
                in_specs.append(pl.BlockSpec(w.shape, lambda i: (0, 0),
                                             pipeline_mode=pl.Buffered(1)))
                in_specs.append(pl.BlockSpec(b.shape, lambda i: (0, 0),
                                             pipeline_mode=pl.Buffered(1)))
            else:
                in_specs.append(pl.BlockSpec(w.shape, lambda i: (0, 0)))
                in_specs.append(pl.BlockSpec(b.shape, lambda i: (0, 0)))
            operands.append(w)
            operands.append(b)

        return pl.pallas_call(
            kernel,
            out_shape=out_shape,
            grid=grid,
            in_specs=in_specs,
            out_specs=out_spec,
            compiler_params=pltpu.CompilerParams(
                dimension_semantics=("parallel",),
                vmem_limit_bytes=vmem_limit,
            ),
            cost_estimate=cost,
        )(*operands)

    try:
        return _run(single_buffer_weights=True)
    except Exception:
        # Fallback for JAX versions without BlockSpec(pipeline_mode=...).
        return _run(single_buffer_weights=False)


class MLPPallas:
    """Mirror of the PyTorch MLP: Linear layers with `hidden_layer_activation`
    between hidden layers, no activation after the last Linear. The whole
    forward pass is a single fused Pallas kernel."""

    def __init__(self, units, hidden_layer_activation="sigmoid", key=None):
        self.units = list(units)
        self.n_layers = len(units)
        self.activation = hidden_layer_activation
        if key is None:
            key = jax.random.PRNGKey(0)

        # Unpadded f32 params (used by the pure-JAX reference), stored (in, out).
        self.weights = []
        self.biases = []
        for layer in range(self.n_layers - 1):
            fan_in = self.units[layer]
            fan_out = self.units[layer + 1]
            key, wk, bk = jax.random.split(key, 3)
            # PyTorch default nn.Linear init: U(-1/sqrt(fan_in), 1/sqrt(fan_in))
            bound = 1.0 / (fan_in ** 0.5)
            w = jax.random.uniform(
                wk, (fan_in, fan_out), jnp.float32, minval=-bound, maxval=bound
            )
            b = jax.random.uniform(
                bk, (fan_out,), jnp.float32, minval=-bound, maxval=bound
            )
            self.weights.append(w)
            self.biases.append(b)

        # Lane-dense (multiple-of-128) zero-padded copies for the kernel.
        # Weights in bf16 (halved DMA + VMEM, native MXU rate); biases f32.
        # Zero rows/cols guarantee padded lanes never contaminate real lanes.
        self.padded_dims = [_round_up(d, 128) for d in self.units]
        self.padded_weights = []
        self.padded_biases = []
        for i, (w, b) in enumerate(zip(self.weights, self.biases)):
            din_p, dout_p = self.padded_dims[i], self.padded_dims[i + 1]
            wp = (jnp.zeros((din_p, dout_p), jnp.bfloat16)
                  .at[: w.shape[0], : w.shape[1]].set(w.astype(jnp.bfloat16)))
            bp = jnp.zeros((1, dout_p), jnp.float32).at[0, : b.shape[0]].set(b)
            self.padded_weights.append(wp)
            self.padded_biases.append(bp)

    def __call__(self, y):
        B = y.shape[0]
        Dout = self.units[-1]
        out_pad = fused_mlp_forward(
            y, self.padded_weights, self.padded_biases, self.activation
        )
        if out_pad.shape != (B, Dout):
            return out_pad[:B, :Dout]
        return out_pad


def _apply_act(y, activation):
    if activation == "sigmoid":
        return jax.nn.sigmoid(y)
    if activation == "tanh":
        return jnp.tanh(y)
    if activation == "relu":
        return jnp.maximum(y, 0.0)
    return y


def _reference_forward_f32(mlp, y):
    n_linear = mlp.n_layers - 1
    for i in range(n_linear):
        y = y @ mlp.weights[i] + mlp.biases[i]
        if i != n_linear - 1:
            y = _apply_act(y, mlp.activation)
    return y


def _reference_forward_bf16(mlp, y):
    # Same numerics as the kernel: bf16 matmul inputs, f32 accumulation.
    n_linear = mlp.n_layers - 1
    for i in range(n_linear):
        y = jnp.dot(y.astype(jnp.bfloat16),
                    mlp.weights[i].astype(jnp.bfloat16),
                    preferred_element_type=jnp.float32) + mlp.biases[i]
        if i != n_linear - 1:
            y = _apply_act(y, mlp.activation)
    return y


if __name__ == "__main__":
    key = jax.random.PRNGKey(0)
    units = [32, 64, 64, 16]  # input dim 32, two hidden layers, output dim 16
    batch = 8

    mlp = MLPPallas(units, hidden_layer_activation="sigmoid",
                    key=jax.random.PRNGKey(42))

    x = jax.random.normal(key, (batch, units[0]), jnp.float32)

    out = mlp(x)
    out = jax.block_until_ready(out)
    assert out.shape == (batch, units[-1])

    # Tight check against a reference that uses the same bf16-matmul numerics.
    ref_bf16 = _reference_forward_bf16(mlp, x)
    assert jnp.allclose(out, ref_bf16, atol=1e-3, rtol=1e-3)

    # Loose sanity check against the full-f32 reference (bf16 matmul error).
    ref_f32 = _reference_forward_f32(mlp, x)
    assert jnp.allclose(out, ref_f32, atol=5e-2, rtol=5e-2)

    print("KERNEL_OK")
</pallas_src>

<mosaic_0001>
module attributes {stable_mosaic.version = 11 : i64} {
  func.func @kernel(%arg0: i32, %arg1: memref<8x128xf32, #tpu.memory_space<vmem>>, %arg2: memref<128x128xbf16, #tpu.memory_space<vmem>>, %arg3: memref<1x128xf32, #tpu.memory_space<vmem>>, %arg4: memref<128x128xbf16, #tpu.memory_space<vmem>>, %arg5: memref<1x128xf32, #tpu.memory_space<vmem>>, %arg6: memref<128x128xbf16, #tpu.memory_space<vmem>>, %arg7: memref<1x128xf32, #tpu.memory_space<vmem>>, %arg8: memref<8x128xf32, #tpu.memory_space<vmem>>) attributes {dimension_semantics = [#tpu.dimension_semantics<parallel>], iteration_bounds = array<i64: 1>, scalar_prefetch = 0 : i64, scratch_operands = 0 : i64, tpu.core_type = #tpu.core_type<tc>, window_params = [{transform_indices = @transform_0, window_bounds = array<i64: 8, 128>}, {pipeline_mode = #tpu.pipeline_mode<synchronous>, transform_indices = @transform_1, window_bounds = array<i64: 128, 128>}, {pipeline_mode = #tpu.pipeline_mode<synchronous>, transform_indices = @transform_2, window_bounds = array<i64: 1, 128>}, {pipeline_mode = #tpu.pipeline_mode<synchronous>, transform_indices = @transform_3, window_bounds = array<i64: 128, 128>}, {pipeline_mode = #tpu.pipeline_mode<synchronous>, transform_indices = @transform_4, window_bounds = array<i64: 1, 128>}, {pipeline_mode = #tpu.pipeline_mode<synchronous>, transform_indices = @transform_5, window_bounds = array<i64: 128, 128>}, {pipeline_mode = #tpu.pipeline_mode<synchronous>, transform_indices = @transform_6, window_bounds = array<i64: 1, 128>}, {transform_indices = @transform_7, window_bounds = array<i64: 8, 128>}]} {
    %c0 = arith.constant 0 : index
    %c0_0 = arith.constant 0 : index
    %0 = vector.load %arg1[%c0, %c0_0] : memref<8x128xf32, #tpu.memory_space<vmem>>, vector<8x128xf32>
    %c0_1 = arith.constant 0 : index
    %c0_2 = arith.constant 0 : index
    %1 = vector.load %arg2[%c0_1, %c0_2] : memref<128x128xbf16, #tpu.memory_space<vmem>>, vector<128x128xbf16>
    %c0_3 = arith.constant 0 : index
    %c0_4 = arith.constant 0 : index
    %2 = vector.load %arg3[%c0_3, %c0_4] : memref<1x128xf32, #tpu.memory_space<vmem>>, vector<1x128xf32>
    %3 = arith.truncf %0 : vector<8x128xf32> to vector<8x128xbf16>
    %cst = arith.constant dense<0.000000e+00> : vector<8x128xf32>
    %4 = tpu.matmul %3, %1, %cst {dimension_numbers = #tpu.dot_dimension_numbers<[1], [0], [0], [1], [0, 0, 1, 1], [], []>} : vector<8x128xbf16>, vector<128x128xbf16>, vector<8x128xf32> -> vector<8x128xf32>
    %5 = vector.broadcast %2 : vector<1x128xf32> to vector<8x128xf32>
    %6 = arith.addf %4, %5 : vector<8x128xf32>
    %7 = arith.negf %6 : vector<8x128xf32>
    %8 = math.exp %7 : vector<8x128xf32>
    %cst_5 = arith.constant 1.000000e+00 : f32
    %9 = vector.broadcast %cst_5 : f32 to vector<8x128xf32>
    %10 = arith.addf %9, %8 : vector<8x128xf32>
    %11 = arith.divf %9, %10 : vector<8x128xf32>
    %c0_6 = arith.constant 0 : index
    %c0_7 = arith.constant 0 : index
    %12 = vector.load %arg4[%c0_6, %c0_7] : memref<128x128xbf16, #tpu.memory_space<vmem>>, vector<128x128xbf16>
    %c0_8 = arith.constant 0 : index
    %c0_9 = arith.constant 0 : index
    %13 = vector.load %arg5[%c0_8, %c0_9] : memref<1x128xf32, #tpu.memory_space<vmem>>, vector<1x128xf32>
    %14 = arith.truncf %11 : vector<8x128xf32> to vector<8x128xbf16>
    %cst_10 = arith.constant dense<0.000000e+00> : vector<8x128xf32>
    %15 = tpu.matmul %14, %12, %cst_10 {dimension_numbers = #tpu.dot_dimension_numbers<[1], [0], [0], [1], [0, 0, 1, 1], [], []>} : vector<8x128xbf16>, vector<128x128xbf16>, vector<8x128xf32> -> vector<8x128xf32>
    %16 = vector.broadcast %13 : vector<1x128xf32> to vector<8x128xf32>
    %17 = arith.addf %15, %16 : vector<8x128xf32>
    %18 = arith.negf %17 : vector<8x128xf32>
    %19 = math.exp %18 : vector<8x128xf32>
    %cst_11 = arith.constant 1.000000e+00 : f32
    %20 = vector.broadcast %cst_11 : f32 to vector<8x128xf32>
    %21 = arith.addf %20, %19 : vector<8x128xf32>
    %22 = arith.divf %20, %21 : vector<8x128xf32>
    %c0_12 = arith.constant 0 : index
    %c0_13 = arith.constant 0 : index
    %23 = vector.load %arg6[%c0_12, %c0_13] : memref<128x128xbf16, #tpu.memory_space<vmem>>, vector<128x128xbf16>
    %c0_14 = arith.constant 0 : index
    %c0_15 = arith.constant 0 : index
    %24 = vector.load %arg7[%c0_14, %c0_15] : memref<1x128xf32, #tpu.memory_space<vmem>>, vector<1x128xf32>
    %25 = arith.truncf %22 : vector<8x128xf32> to vector<8x128xbf16>
    %cst_16 = arith.constant dense<0.000000e+00> : vector<8x128xf32>
    %26 = tpu.matmul %25, %23, %cst_16 {dimension_numbers = #tpu.dot_dimension_numbers<[1], [0], [0], [1], [0, 0, 1, 1], [], []>} : vector<8x128xbf16>, vector<128x128xbf16>, vector<8x128xf32> -> vector<8x128xf32>
    %27 = vector.broadcast %24 : vector<1x128xf32> to vector<8x128xf32>
    %28 = arith.addf %26, %27 : vector<8x128xf32>
    %c0_17 = arith.constant 0 : index
    %c0_18 = arith.constant 0 : index
    %29 = vector.load %arg8[%c0_17, %c0_18] : memref<8x128xf32, #tpu.memory_space<vmem>>, vector<8x128xf32>
    tpu.vector_store %arg8[%c0_17, %c0_18], %28 {strides = array<i32>} : memref<8x128xf32, #tpu.memory_space<vmem>>, vector<8x128xf32>,
    return
  }
  func.func @transform_0(%arg0: i32) -> (i32, i32) {
    %c0_i32 = arith.constant 0 : i32
    %c0_i32_0 = arith.constant 0 : i32
    return %arg0, %c0_i32 : i32, i32
  }
  func.func @transform_1(%arg0: i32) -> (i32, i32) {
    %c0_i32 = arith.constant 0 : i32
    %c0_i32_0 = arith.constant 0 : i32
    %c0_i32_1 = arith.constant 0 : i32
    return %c0_i32, %c0_i32_0 : i32, i32
  }
  func.func @transform_2(%arg0: i32) -> (i32, i32) {
    %c0_i32 = arith.constant 0 : i32
    %c0_i32_0 = arith.constant 0 : i32
    %c0_i32_1 = arith.constant 0 : i32
    return %c0_i32, %c0_i32_0 : i32, i32
  }
  func.func @transform_3(%arg0: i32) -> (i32, i32) {
    %c0_i32 = arith.constant 0 : i32
    %c0_i32_0 = arith.constant 0 : i32
    %c0_i32_1 = arith.constant 0 : i32
    return %c0_i32, %c0_i32_0 : i32, i32
  }
  func.func @transform_4(%arg0: i32) -> (i32, i32) {
    %c0_i32 = arith.constant 0 : i32
    %c0_i32_0 = arith.constant 0 : i32
    %c0_i32_1 = arith.constant 0 : i32
    return %c0_i32, %c0_i32_0 : i32, i32
  }
  func.func @transform_5(%arg0: i32) -> (i32, i32) {
    %c0_i32 = arith.constant 0 : i32
    %c0_i32_0 = arith.constant 0 : i32
    %c0_i32_1 = arith.constant 0 : i32
    return %c0_i32, %c0_i32_0 : i32, i32
  }
  func.func @transform_6(%arg0: i32) -> (i32, i32) {
    %c0_i32 = arith.constant 0 : i32
    %c0_i32_0 = arith.constant 0 : i32
    %c0_i32_1 = arith.constant 0 : i32
    return %c0_i32, %c0_i32_0 : i32, i32
  }
  func.func @transform_7(%arg0: i32) -> (i32, i32) {
    %c0_i32 = arith.constant 0 : i32
    %c0_i32_0 = arith.constant 0 : i32
    return %arg0, %c0_i32 : i32, i32
  }
}

module attributes {stable_mosaic.version = 11 : i64} {
  func.func @kernel(%arg0: i32, %arg1: memref<8x128xf32, #tpu.memory_space<vmem>>, %arg2: memref<128x128xbf16, #tpu.memory_space<vmem>>, %arg3: memref<1x128xf32, #tpu.memory_space<vmem>>, %arg4: memref<128x128xbf16, #tpu.memory_space<vmem>>, %arg5: memref<1x128xf32, #tpu.memory_space<vmem>>, %arg6: memref<128x128xbf16, #tpu.memory_space<vmem>>, %arg7: memref<1x128xf32, #tpu.memory_space<vmem>>, %arg8: memref<8x128xf32, #tpu.memory_space<vmem>>) attributes {dimension_semantics = [#tpu.dimension_semantics<parallel>], iteration_bounds = array<i64: 1>, scalar_prefetch = 0 : i64, scratch_operands = 0 : i64, tpu.core_type = #tpu.core_type<tc>, window_params = [{transform_indices = @transform_0, window_bounds = array<i64: 8, 128>}, {pipeline_mode = #tpu.pipeline_mode<synchronous>, transform_indices = @transform_1, window_bounds = array<i64: 128, 128>}, {pipeline_mode = #tpu.pipeline_mode<synchronous>, transform_indices = @transform_2, window_bounds = array<i64: 1, 128>}, {pipeline_mode = #tpu.pipeline_mode<synchronous>, transform_indices = @transform_3, window_bounds = array<i64: 128, 128>}, {pipeline_mode = #tpu.pipeline_mode<synchronous>, transform_indices = @transform_4, window_bounds = array<i64: 1, 128>}, {pipeline_mode = #tpu.pipeline_mode<synchronous>, transform_indices = @transform_5, window_bounds = array<i64: 128, 128>}, {pipeline_mode = #tpu.pipeline_mode<synchronous>, transform_indices = @transform_6, window_bounds = array<i64: 1, 128>}, {transform_indices = @transform_7, window_bounds = array<i64: 8, 128>}]} {
    %c0 = arith.constant 0 : index
    %c0_0 = arith.constant 0 : index
    %0 = vector.load %arg1[%c0, %c0_0] : memref<8x128xf32, #tpu.memory_space<vmem>>, vector<8x128xf32>
    %c0_1 = arith.constant 0 : index
    %c0_2 = arith.constant 0 : index
    %1 = vector.load %arg2[%c0_1, %c0_2] : memref<128x128xbf16, #tpu.memory_space<vmem>>, vector<128x128xbf16>
    %c0_3 = arith.constant 0 : index
    %c0_4 = arith.constant 0 : index
    %2 = vector.load %arg3[%c0_3, %c0_4] : memref<1x128xf32, #tpu.memory_space<vmem>>, vector<1x128xf32>
    %3 = arith.truncf %0 : vector<8x128xf32> to vector<8x128xbf16>
    %cst = arith.constant dense<0.000000e+00> : vector<8x128xf32>
    %4 = tpu.matmul %3, %1, %cst {dimension_numbers = #tpu.dot_dimension_numbers<[1], [0], [0], [1], [0, 0, 1, 1], [], []>} : vector<8x128xbf16>, vector<128x128xbf16>, vector<8x128xf32> -> vector<8x128xf32>
    %5 = vector.broadcast %2 : vector<1x128xf32> to vector<8x128xf32>
    %6 = arith.addf %4, %5 : vector<8x128xf32>
    %7 = arith.negf %6 : vector<8x128xf32>
    %8 = math.exp %7 : vector<8x128xf32>
    %cst_5 = arith.constant 1.000000e+00 : f32
    %9 = vector.broadcast %cst_5 : f32 to vector<8x128xf32>
    %10 = arith.addf %9, %8 : vector<8x128xf32>
    %11 = arith.divf %9, %10 : vector<8x128xf32>
    %c0_6 = arith.constant 0 : index
    %c0_7 = arith.constant 0 : index
    %12 = vector.load %arg4[%c0_6, %c0_7] : memref<128x128xbf16, #tpu.memory_space<vmem>>, vector<128x128xbf16>
    %c0_8 = arith.constant 0 : index
    %c0_9 = arith.constant 0 : index
    %13 = vector.load %arg5[%c0_8, %c0_9] : memref<1x128xf32, #tpu.memory_space<vmem>>, vector<1x128xf32>
    %14 = arith.truncf %11 : vector<8x128xf32> to vector<8x128xbf16>
    %cst_10 = arith.constant dense<0.000000e+00> : vector<8x128xf32>
    %15 = tpu.matmul %14, %12, %cst_10 {dimension_numbers = #tpu.dot_dimension_numbers<[1], [0], [0], [1], [0, 0, 1, 1], [], []>} : vector<8x128xbf16>, vector<128x128xbf16>, vector<8x128xf32> -> vector<8x128xf32>
    %16 = vector.broadcast %13 : vector<1x128xf32> to vector<8x128xf32>
    %17 = arith.addf %15, %16 : vector<8x128xf32>
    %18 = arith.negf %17 : vector<8x128xf32>
    %19 = math.exp %18 : vector<8x128xf32>
    %cst_11 = arith.constant 1.000000e+00 : f32
    %20 = vector.broadcast %cst_11 : f32 to vector<8x128xf32>
    %21 = arith.addf %20, %19 : vector<8x128xf32>
    %22 = arith.divf %20, %21 : vector<8x128xf32>
    %c0_12 = arith.constant 0 : index
    %c0_13 = arith.constant 0 : index
    %23 = vector.load %arg6[%c0_12, %c0_13] : memref<128x128xbf16, #tpu.memory_space<vmem>>, vector<128x128xbf16>
    %c0_14 = arith.constant 0 : index
    %c0_15 = arith.constant 0 : index
    %24 = vector.load %arg7[%c0_14, %c0_15] : memref<1x128xf32, #tpu.memory_space<vmem>>, vector<1x128xf32>
    %25 = arith.truncf %22 : vector<8x128xf32> to vector<8x128xbf16>
    %cst_16 = arith.constant dense<0.000000e+00> : vector<8x128xf32>
    %26 = tpu.matmul %25, %23, %cst_16 {dimension_numbers = #tpu.dot_dimension_numbers<[1], [0], [0], [1], [0, 0, 1, 1], [], []>} : vector<8x128xbf16>, vector<128x128xbf16>, vector<8x128xf32> -> vector<8x128xf32>
    %27 = vector.broadcast %24 : vector<1x128xf32> to vector<8x128xf32>
    %28 = arith.addf %26, %27 : vector<8x128xf32>
    %c0_17 = arith.constant 0 : index
    %c0_18 = arith.constant 0 : index
    %29 = vector.load %arg8[%c0_17, %c0_18] : memref<8x128xf32, #tpu.memory_space<vmem>>, vector<8x128xf32>
    tpu.vector_store %arg8[%c0_17, %c0_18], %28 {strides = array<i32>} : memref<8x128xf32, #tpu.memory_space<vmem>>, vector<8x128xf32>,
    return
  }
  func.func @transform_0(%arg0: i32) -> (i32, i32) {
    %c0_i32 = arith.constant 0 : i32
    %c0_i32_0 = arith.constant 0 : i32
    return %arg0, %c0_i32 : i32, i32
  }
  func.func @transform_1(%arg0: i32) -> (i32, i32) {
    %c0_i32 = arith.constant 0 : i32
    %c0_i32_0 = arith.constant 0 : i32
    %c0_i32_1 = arith.constant 0 : i32
    return %c0_i32, %c0_i32_0 : i32, i32
  }
  func.func @transform_2(%arg0: i32) -> (i32, i32) {
    %c0_i32 = arith.constant 0 : i32
    %c0_i32_0 = arith.constant 0 : i32
    %c0_i32_1 = arith.constant 0 : i32
    return %c0_i32, %c0_i32_0 : i32, i32
  }
  func.func @transform_3(%arg0: i32) -> (i32, i32) {
    %c0_i32 = arith.constant 0 : i32
    %c0_i32_0 = arith.constant 0 : i32
    %c0_i32_1 = arith.constant 0 : i32
    return %c0_i32, %c0_i32_0 : i32, i32
  }
  func.func @transform_4(%arg0: i32) -> (i32, i32) {
    %c0_i32 = arith.constant 0 : i32
    %c0_i32_0 = arith.constant 0 : i32
    %c0_i32_1 = arith.constant 0 : i32
    return %c0_i32, %c0_i32_0 : i32, i32
  }
  func.func @transform_5(%arg0: i32) -> (i32, i32) {
    %c0_i32 = arith.constant 0 : i32
    %c0_i32_0 = arith.constant 0 : i32
    %c0_i32_1 = arith.constant 0 : i32
    return %c0_i32, %c0_i32_0 : i32, i32
  }
  func.func @transform_6(%arg0: i32) -> (i32, i32) {
    %c0_i32 = arith.constant 0 : i32
    %c0_i32_0 = arith.constant 0 : i32
    %c0_i32_1 = arith.constant 0 : i32
    return %c0_i32, %c0_i32_0 : i32, i32
  }
  func.func @transform_7(%arg0: i32) -> (i32, i32) {
    %c0_i32 = arith.constant 0 : i32
    %c0_i32_0 = arith.constant 0 : i32
    return %arg0, %c0_i32 : i32, i32
  }
}

</mosaic_0001>

<bundles_post_ra>
// kernel: tpu_custom_call.1
= control target key start
LH: loop header
LB: loop body
LE: loop exit
PB: predicated region body
PF: predicated region fallthrough
CT: control target
= control target key end

     0   :  { %12 = vsyncpa [#allocation3], 0  ;;  %s732_s0 = inlined_call_operand.hbm [shape: f32[8,128], index: 0, kind: input, shape index: {}]   ;;  %s733_s1 = inlined_call_operand.hbm [shape: bf16[128,128], index: 1, kind: input, shape index: {}]   ;;  %s734_s2 = inlined_call_operand.vmem [shape: f32[1,128], index: 2, kind: input, shape index: {}]   ;;  %s735_s3 = inlined_call_operand.hbm [shape: bf16[128,128], index: 3, kind: input, shape index: {}]   ;;  %s736_s4 = inlined_call_operand.vmem [shape: f32[1,128], index: 4, kind: input, shape index: {}]   ;;  %s737_s5 = inlined_call_operand.hbm [shape: bf16[128,128], index: 5, kind: input, shape index: {}]   ;;  %s738_s6 = inlined_call_operand.vmem [shape: f32[1,128], index: 6, kind: input, shape index: {}]   ;;  %s739_s7 = inlined_call_operand.hbm [shape: f32[8,128], index: 7, kind: output, shape index: {}]  }
   0x1   :  { %13 = vsyncpa [#allocation6], 0 }
   0x2   :  { %14 = vsyncpa [#allocation9], 0  ;;  %s31_s26 = sshll.u32 %s733_s1, 4  ;;  %s32_s26 = int_to_ptr.hbm [resolvable:$true] %s31_s26 }
   0x3   :  { %15 = vsyncpa [#allocation4], 0  ;;  %s661_s27 = smov [#allocation5]   ;;  %s21_s8 = sshll.u32 %s732_s0, 4  ;;  %s22_s8 = int_to_ptr.hbm [resolvable:$true] %s21_s8 }
   0x4   :  { %s33_s28 = sshll.u32 %s661_s27, 4  ;;  %s662_s9 = smov 64   ;;  %s34_s28 = int_to_ptr.vmem [resolvable:$true] %s33_s28 }
   0x5   :  { %s663_s10 = smov 4   ;;  %s664_s11 = smov [#allocation2]  }
   0x6   :  { %39 = dma.hbm_to_vmem [thread:$0]  %s32_s26, 1024, %s34_s28, [#allocation6], %s662_s9, %s662_s9, %s663_s10  }
   0x7   :  { %s23_s12 = sshll.u32 %s664_s11, 4  ;;  %s46_s15 = sshll.u32 %s735_s3, 4  ;;  %s24_s12 = int_to_ptr.vmem [resolvable:$true] %s23_s12  ;;  %s47_s15 = int_to_ptr.hbm [resolvable:$true] %s46_s15 }
   0x8   :  { %26 = dma.hbm_to_vmem [thread:$0]  %s22_s8, 128, %s24_s12, [#allocation3]  }
   0x9   :  { %s61_s17 = sshll.u32 %s737_s5, 4  ;;  %s665_s18 = smov [#allocation7]   ;;  %s62_s17 = int_to_ptr.hbm [resolvable:$true] %s61_s17 }
   0xa   :  { %s48_s19 = sshll.u32 %s665_s18, 4  ;;  %s666_s0 = smov [#allocation8]   ;;  %s49_s19 = int_to_ptr.vmem [resolvable:$true] %s48_s19 }
   0xb   :  { %54 = dma.hbm_to_vmem [thread:$0]  %s47_s15, 1024, %s49_s19, [#allocation6], %s662_s9, %s662_s9, %s663_s10  }
   0xc   :  { %s63_s20 = sshll.u32 %s666_s0, 4  ;;  %s64_s20 = int_to_ptr.vmem [resolvable:$true] %s63_s20 }
   0xd   :  { %69 = dma.hbm_to_vmem [thread:$0]  %s62_s17, 1024, %s64_s20, [#allocation9], %s662_s9, %s662_s9, %s663_s10  }
   0xe   :  { %653 = dma.done.wait [#allocation3], 128  }
   0xf   :  { %654 = vsyncadd [#allocation3], 4294967168 }
  0x10   :  { %655 = dma.done.wait [#allocation6], 2048  }
  0x11   :  { %656 = vsyncadd [#allocation6], 4294965248 }
  0x12   :  { %657 = dma.done.wait [#allocation9], 1024  }
  0x13   :  { %658 = vsyncadd [#allocation9], 4294966272  ;;  %v498_v0 = vld [vmem:[#allocation5 + $0x38] sm:$0xff]  ;;  %v497_v1 = vld [vmem:[#allocation5 + $0x30] sm:$0xff]  ;;  %s667_s23 = smov [#allocation10]   ;;  %s381_s27 = sshll.u32 %s739_s7, 4  ;;  %s382_s27 = int_to_ptr.hbm [resolvable:$true] %s381_s27 }
  0x14   :  { %158 = vmatpush.bf16.msra.mxu0 %v498_v0  ;;  %v496_v2 = vld [vmem:[#allocation5 + $0x28] sm:$0xff]  ;;  %v495_v3 = vld [vmem:[#allocation5 + $0x20] sm:$0xff]  ;;  %v494_v4 = vld [vmem:[#allocation5 + $0x18] sm:$0xff]  ;;  %s379_s24 = sshll.u32 %s667_s23, 4  ;;  %s380_s24 = int_to_ptr.vmem [resolvable:$true] %s379_s24 }
  0x15   :  { %v493_v5 = vld [vmem:[#allocation5 + $0x10] sm:$0xff]  ;;  %v492_v6 = vld [vmem:[#allocation5 + $0x8] sm:$0xff]  ;;  %v491_v7 = vld [vmem:[#allocation5] sm:$0xff] }
  0x16   :  { %v88_v8 = vld [vmem:[#allocation2] sm:$0xff]  ;;  %v505_v11 = vld [vmem:[#allocation7 + $0x30] sm:$0xff]  ;;  %v504_v12 = vld [vmem:[#allocation7 + $0x28] sm:$0xff] }
  0x17   :  { %v106_v9 = vpack.c.bf16 %v88_v8, %v88_v8  ;;  %v506_v10 = vld [vmem:[#allocation7 + $0x38] sm:$0xff]  ;;  %v503_v13 = vld [vmem:[#allocation7 + $0x20] sm:$0xff]  ;;  %v501_v15 = vld [vmem:[#allocation7 + $0x10] sm:$0xff] }
  0x18   :  { %159 = vmatpush.bf16.msra.mxu0 %v497_v1  ;;  %259 = vmatpush.bf16.msra.mxu1 %v506_v10  ;;  %v502_v14 = vld [vmem:[#allocation7 + $0x18] sm:$0xff]  ;;  %v500_v16 = vld [vmem:[#allocation7 + $0x8] sm:$0xff]  ;;  %v499_v17 = vld [vmem:[#allocation7] sm:$0xff] }
  0x19   :  { %v522_v18 = vld [vmem:[%s734_s2] ss:$0 sm:$0xff]  ;;  %v513_v37 = vld [vmem:[#allocation8 + $0x30] sm:$0xff]  ;;  %v512_v38 = vld [vmem:[#allocation8 + $0x28] sm:$0xff] }
  0x1a   :  { %v514_v36 = vld [vmem:[#allocation8 + $0x38] sm:$0xff]  ;;  %v511_v39 = vld [vmem:[#allocation8 + $0x20] sm:$0xff]  ;;  %v509_v41 = vld [vmem:[#allocation8 + $0x10] sm:$0xff] }
  0x1b   :  { %360 = vmatpush.bf16.msra.mxu2 %v514_v36  ;;  %v510_v40 = vld [vmem:[#allocation8 + $0x18] sm:$0xff]  ;;  %v508_v42 = vld [vmem:[#allocation8 + $0x8] sm:$0xff]  ;;  %v507_v43 = vld [vmem:[#allocation8] sm:$0xff] }
  0x1c   :  { %160 = vmatpush.bf16.msra.mxu0 %v496_v2  ;;  %260 = vmatpush.bf16.msra.mxu1 %v505_v11  ;;  %v523_v44 = vld [vmem:[%s736_s4] ss:$0 sm:$0xff] }
  0x1d   :  { %v524_v62 = vld [vmem:[%s738_s6] ss:$0 sm:$0xff] }
  0x1f   :  { %361 = vmatpush.bf16.msra.mxu2 %v513_v37 }
  0x20   :  { %161 = vmatpush.bf16.msra.mxu0 %v495_v3  ;;  %261 = vmatpush.bf16.msra.mxu1 %v504_v12 }
  0x23   :  { %362 = vmatpush.bf16.msra.mxu2 %v512_v38 }
  0x24   :  { %162 = vmatpush.bf16.msra.mxu0 %v494_v4  ;;  %262 = vmatpush.bf16.msra.mxu1 %v503_v13 }
  0x27   :  { %363 = vmatpush.bf16.msra.mxu2 %v511_v39 }
  0x28   :  { %163 = vmatpush.bf16.msra.mxu0 %v493_v5  ;;  %263 = vmatpush.bf16.msra.mxu1 %v502_v14 }
  0x2b   :  { %364 = vmatpush.bf16.msra.mxu2 %v510_v40 }
  0x2c   :  { %164 = vmatpush.bf16.msra.mxu0 %v492_v6  ;;  %264 = vmatpush.bf16.msra.mxu1 %v501_v15 }
  0x2f   :  { %365 = vmatpush.bf16.msra.mxu2 %v509_v41 }
  0x30   :  { %165 = vmatpush.bf16.msra.mxu0 %v491_v7  ;;  %265 = vmatpush.bf16.msra.mxu1 %v500_v16 }
  0x33   :  { %166 = vmatmul.bf16.vlgmr.msra.gmra.mxu0 %v106_v9  ;;  %366 = vmatpush.bf16.msra.mxu2 %v508_v42 }
  0x34   :  { %266 = vmatpush.bf16.msra.mxu1 %v499_v17 }
  0x37   :  { %367 = vmatpush.bf16.msra.mxu2 %v507_v43 }
  0xb0   :  { %v167_v19 = vpop.f32.mrf.mxu0 }
  0xb1   :  { %v168_v20 = vadd.f32 %v522_v18, %v167_v19 }
  0xb3   :  { %v425_v21 = vmul.f32 -1.442695, %v168_v20 }
  0xb5   :  { %525 = vpow2.f32 %v425_v21 }
  0xb8   :  { %v169_v22 = vpop.f32.mrf.mxu0 }
  0xbb   :  { %v526_v23 = vpop.eup %525 }
  0xbc   :  { %v174_v24 = vadd.f32 1.0, %v526_v23 }
  0xbe   :  { %527 = vrcp.f32 %v174_v24  ;;  %v186_v28 = vand.u32 2147483648, %v174_v24  ;;  %v184_v30 = vand.u32 2147483647, %v174_v24  ;;  %vm180_vm1 = vweird.f32 %v174_v24 }
  0xc0   :  { %v187_v32 = vor.u32 1.1754944e-38, %v186_v28  ;;  %vm185_vm3 = vcmp.eq.f32.partialorder %v184_v30, 8.507059e+37 }
  0xc4   :  { %v528_v25 = vpop.eup %527 }
  0xc5   :  { %v176_v26 = vmul.f32 %v528_v25, %v174_v24  ;;  %vm181_vm0 = vweird.f32 %v528_v25 }
  0xc6   :  { %vm182_vm2 = vmor %vm180_vm1, %vm181_vm0 }
  0xc7   :  { %v177_v27 = vsub.f32 1.0, %v176_v26 }
  0xc9   :  { %v178_v29 = vmul.f32 %v528_v25, %v177_v27 }
  0xcb   :  { %v179_v31 = vadd.f32 %v528_v25, %v178_v29 }
  0xcd   :  { %v183_v33 = vsel %vm182_vm2, %v528_v25, %v179_v31 }
  0xce   :  { %v188_v34 = vsel %vm185_vm3, %v187_v32, %v183_v33 }
  0xcf   :  { %v207_v35 = vpack.c.bf16 %v188_v34, %v188_v34 }
  0xd1   :  { %267 = vmatmul.bf16.vlgmr.msra.gmra.mxu1 %v207_v35 }
 0x14e   :  { %v268_v45 = vpop.f32.mrf.mxu1 }
 0x14f   :  { %v269_v46 = vadd.f32 %v523_v44, %v268_v45 }
 0x151   :  { %v458_v47 = vmul.f32 -1.442695, %v269_v46 }
 0x153   :  { %529 = vpow2.f32 %v458_v47 }
 0x156   :  { %v270_v48 = vpop.f32.mrf.mxu1 }
 0x159   :  { %v530_v49 = vpop.eup %529 }
 0x15a   :  { %v275_v50 = vadd.f32 1.0, %v530_v49 }
 0x15c   :  { %531 = vrcp.f32 %v275_v50  ;;  %v287_v54 = vand.u32 2147483648, %v275_v50  ;;  %v285_v56 = vand.u32 2147483647, %v275_v50  ;;  %vm281_vm5 = vweird.f32 %v275_v50 }
 0x15e   :  { %v288_v58 = vor.u32 1.1754944e-38, %v287_v54  ;;  %vm286_vm7 = vcmp.eq.f32.partialorder %v285_v56, 8.507059e+37 }
 0x162   :  { %v532_v51 = vpop.eup %531 }
 0x163   :  { %v277_v52 = vmul.f32 %v532_v51, %v275_v50  ;;  %vm282_vm4 = vweird.f32 %v532_v51 }
 0x164   :  { %vm283_vm6 = vmor %vm281_vm5, %vm282_vm4 }
 0x165   :  { %v278_v53 = vsub.f32 1.0, %v277_v52 }
 0x167   :  { %v279_v55 = vmul.f32 %v532_v51, %v278_v53 }
 0x169   :  { %v280_v57 = vadd.f32 %v532_v51, %v279_v55 }
 0x16b   :  { %v284_v59 = vsel %vm283_vm6, %v532_v51, %v280_v57 }
 0x16c   :  { %v289_v60 = vsel %vm286_vm7, %v288_v58, %v284_v59 }
 0x16d   :  { %v308_v61 = vpack.c.bf16 %v289_v60, %v289_v60 }
 0x16f   :  { %368 = vmatmul.bf16.vlgmr.msra.gmra.mxu2 %v308_v61 }
 0x1f2   :  { %v369_v63 = vpop.f32.mrf.mxu2 }
 0x1f3   :  { %v370_v0 = vadd.f32 %v524_v62, %v369_v63 }
 0x1f5   :  { %373 = vst [vmem:[#allocation10] sm:$0xff] %v370_v0 }
 0x1f6   :  { %384 = dma.vmem_to_hbm [thread:$0]  %s380_s24, 128, %s382_s27, [#allocation4]  }
 0x1fa   :  { %v371_v1 = vpop.f32.mrf.mxu2 }
 0x1fb   :  { %659 = dma.done.wait [#allocation4], 128  }
 0x1fc   :  { %660 = vsyncadd [#allocation4], 4294967168 }
 0x1fd   :  { %389 = vsyncpa [#allocation3], 1 }
 0x1fe   :  { %390 = vsyncpa [#allocation6], 1 }
 0x1ff   :  { %391 = vsyncpa [#allocation9], 1 }
 0x200   :  { %392 = vsyncpa [#allocation4], 1 }

// kernel: tpu_custom_call.1
= control target key start
LH: loop header
LB: loop body
LE: loop exit
PB: predicated region body
PF: predicated region fallthrough
CT: control target
= control target key end

     0   :  { %12 = vsyncpa [#allocation3], 0  ;;  %s732_s0 = inlined_call_operand.hbm [shape: f32[8,128], index: 0, kind: input, shape index: {}]   ;;  %s733_s1 = inlined_call_operand.hbm [shape: bf16[128,128], index: 1, kind: input, shape index: {}]   ;;  %s734_s2 = inlined_call_operand.vmem [shape: f32[1,128], index: 2, kind: input, shape index: {}]   ;;  %s735_s3 = inlined_call_operand.hbm [shape: bf16[128,128], index: 3, kind: input, shape index: {}]   ;;  %s736_s4 = inlined_call_operand.vmem [shape: f32[1,128], index: 4, kind: input, shape index: {}]   ;;  %s737_s5 = inlined_call_operand.hbm [shape: bf16[128,128], index: 5, kind: input, shape index: {}]   ;;  %s738_s6 = inlined_call_operand.vmem [shape: f32[1,128], index: 6, kind: input, shape index: {}]   ;;  %s739_s7 = inlined_call_operand.hbm [shape: f32[8,128], index: 7, kind: output, shape index: {}]  }
   0x1   :  { %13 = vsyncpa [#allocation6], 0 }
   0x2   :  { %14 = vsyncpa [#allocation9], 0  ;;  %s31_s26 = sshll.u32 %s733_s1, 4  ;;  %s32_s26 = int_to_ptr.hbm [resolvable:$true] %s31_s26 }
   0x3   :  { %15 = vsyncpa [#allocation4], 0  ;;  %s661_s27 = smov [#allocation5]   ;;  %s21_s8 = sshll.u32 %s732_s0, 4  ;;  %s22_s8 = int_to_ptr.hbm [resolvable:$true] %s21_s8 }
   0x4   :  { %s33_s28 = sshll.u32 %s661_s27, 4  ;;  %s662_s9 = smov 64   ;;  %s34_s28 = int_to_ptr.vmem [resolvable:$true] %s33_s28 }
   0x5   :  { %s663_s10 = smov 4   ;;  %s664_s11 = smov [#allocation2]  }
   0x6   :  { %39 = dma.hbm_to_vmem [thread:$0]  %s32_s26, 1024, %s34_s28, [#allocation6], %s662_s9, %s662_s9, %s663_s10  }
   0x7   :  { %s23_s12 = sshll.u32 %s664_s11, 4  ;;  %s46_s15 = sshll.u32 %s735_s3, 4  ;;  %s24_s12 = int_to_ptr.vmem [resolvable:$true] %s23_s12  ;;  %s47_s15 = int_to_ptr.hbm [resolvable:$true] %s46_s15 }
   0x8   :  { %26 = dma.hbm_to_vmem [thread:$0]  %s22_s8, 128, %s24_s12, [#allocation3]  }
   0x9   :  { %s61_s17 = sshll.u32 %s737_s5, 4  ;;  %s665_s18 = smov [#allocation7]   ;;  %s62_s17 = int_to_ptr.hbm [resolvable:$true] %s61_s17 }
   0xa   :  { %s48_s19 = sshll.u32 %s665_s18, 4  ;;  %s666_s0 = smov [#allocation8]   ;;  %s49_s19 = int_to_ptr.vmem [resolvable:$true] %s48_s19 }
   0xb   :  { %54 = dma.hbm_to_vmem [thread:$0]  %s47_s15, 1024, %s49_s19, [#allocation6], %s662_s9, %s662_s9, %s663_s10  }
   0xc   :  { %s63_s20 = sshll.u32 %s666_s0, 4  ;;  %s64_s20 = int_to_ptr.vmem [resolvable:$true] %s63_s20 }
   0xd   :  { %69 = dma.hbm_to_vmem [thread:$0]  %s62_s17, 1024, %s64_s20, [#allocation9], %s662_s9, %s662_s9, %s663_s10  }
   0xe   :  { %653 = dma.done.wait [#allocation3], 128  }
   0xf   :  { %654 = vsyncadd [#allocation3], 4294967168 }
  0x10   :  { %655 = dma.done.wait [#allocation6], 2048  }
  0x11   :  { %656 = vsyncadd [#allocation6], 4294965248 }
  0x12   :  { %657 = dma.done.wait [#allocation9], 1024  }
  0x13   :  { %658 = vsyncadd [#allocation9], 4294966272  ;;  %v498_v0 = vld [vmem:[#allocation5 + $0x38] sm:$0xff]  ;;  %v497_v1 = vld [vmem:[#allocation5 + $0x30] sm:$0xff]  ;;  %s667_s23 = smov [#allocation10]   ;;  %s381_s27 = sshll.u32 %s739_s7, 4  ;;  %s382_s27 = int_to_ptr.hbm [resolvable:$true] %s381_s27 }
  0x14   :  { %158 = vmatpush.bf16.msra.mxu0 %v498_v0  ;;  %v496_v2 = vld [vmem:[#allocation5 + $0x28] sm:$0xff]  ;;  %v495_v3 = vld [vmem:[#allocation5 + $0x20] sm:$0xff]  ;;  %v494_v4 = vld [vmem:[#allocation5 + $0x18] sm:$0xff]  ;;  %s379_s24 = sshll.u32 %s667_s23, 4  ;;  %s380_s24 = int_to_ptr.vmem [resolvable:$true] %s379_s24 }
  0x15   :  { %v493_v5 = vld [vmem:[#allocation5 + $0x10] sm:$0xff]  ;;  %v492_v6 = vld [vmem:[#allocation5 + $0x8] sm:$0xff]  ;;  %v491_v7 = vld [vmem:[#allocation5] sm:$0xff] }
  0x16   :  { %v88_v8 = vld [vmem:[#allocation2] sm:$0xff]  ;;  %v505_v11 = vld [vmem:[#allocation7 + $0x30] sm:$0xff]  ;;  %v504_v12 = vld [vmem:[#allocation7 + $0x28] sm:$0xff] }
  0x17   :  { %v106_v9 = vpack.c.bf16 %v88_v8, %v88_v8  ;;  %v506_v10 = vld [vmem:[#allocation7 + $0x38] sm:$0xff]  ;;  %v503_v13 = vld [vmem:[#allocation7 + $0x20] sm:$0xff]  ;;  %v501_v15 = vld [vmem:[#allocation7 + $0x10] sm:$0xff] }
  0x18   :  { %159 = vmatpush.bf16.msra.mxu0 %v497_v1  ;;  %259 = vmatpush.bf16.msra.mxu1 %v506_v10  ;;  %v502_v14 = vld [vmem:[#allocation7 + $0x18] sm:$0xff]  ;;  %v500_v16 = vld [vmem:[#allocation7 + $0x8] sm:$0xff]  ;;  %v499_v17 = vld [vmem:[#allocation7] sm:$0xff] }
  0x19   :  { %v522_v18 = vld [vmem:[%s734_s2] ss:$0 sm:$0xff]  ;;  %v513_v37 = vld [vmem:[#allocation8 + $0x30] sm:$0xff]  ;;  %v512_v38 = vld [vmem:[#allocation8 + $0x28] sm:$0xff] }
  0x1a   :  { %v514_v36 = vld [vmem:[#allocation8 + $0x38] sm:$0xff]  ;;  %v511_v39 = vld [vmem:[#allocation8 + $0x20] sm:$0xff]  ;;  %v509_v41 = vld [vmem:[#allocation8 + $0x10] sm:$0xff] }
  0x1b   :  { %360 = vmatpush.bf16.msra.mxu2 %v514_v36  ;;  %v510_v40 = vld [vmem:[#allocation8 + $0x18] sm:$0xff]  ;;  %v508_v42 = vld [vmem:[#allocation8 + $0x8] sm:$0xff]  ;;  %v507_v43 = vld [vmem:[#allocation8] sm:$0xff] }
  0x1c   :  { %160 = vmatpush.bf16.msra.mxu0 %v496_v2  ;;  %260 = vmatpush.bf16.msra.mxu1 %v505_v11  ;;  %v523_v44 = vld [vmem:[%s736_s4] ss:$0 sm:$0xff] }
  0x1d   :  { %v524_v62 = vld [vmem:[%s738_s6] ss:$0 sm:$0xff] }
  0x1f   :  { %361 = vmatpush.bf16.msra.mxu2 %v513_v37 }
  0x20   :  { %161 = vmatpush.bf16.msra.mxu0 %v495_v3  ;;  %261 = vmatpush.bf16.msra.mxu1 %v504_v12 }
  0x23   :  { %362 = vmatpush.bf16.msra.mxu2 %v512_v38 }
  0x24   :  { %162 = vmatpush.bf16.msra.mxu0 %v494_v4  ;;  %262 = vmatpush.bf16.msra.mxu1 %v503_v13 }
  0x27   :  { %363 = vmatpush.bf16.msra.mxu2 %v511_v39 }
  0x28   :  { %163 = vmatpush.bf16.msra.mxu0 %v493_v5  ;;  %263 = vmatpush.bf16.msra.mxu1 %v502_v14 }
  0x2b   :  { %364 = vmatpush.bf16.msra.mxu2 %v510_v40 }
  0x2c   :  { %164 = vmatpush.bf16.msra.mxu0 %v492_v6  ;;  %264 = vmatpush.bf16.msra.mxu1 %v501_v15 }
  0x2f   :  { %365 = vmatpush.bf16.msra.mxu2 %v509_v41 }
  0x30   :  { %165 = vmatpush.bf16.msra.mxu0 %v491_v7  ;;  %265 = vmatpush.bf16.msra.mxu1 %v500_v16 }
  0x33   :  { %166 = vmatmul.bf16.vlgmr.msra.gmra.mxu0 %v106_v9  ;;  %366 = vmatpush.bf16.msra.mxu2 %v508_v42 }
  0x34   :  { %266 = vmatpush.bf16.msra.mxu1 %v499_v17 }
  0x37   :  { %367 = vmatpush.bf16.msra.mxu2 %v507_v43 }
  0xb0   :  { %v167_v19 = vpop.f32.mrf.mxu0 }
  0xb1   :  { %v168_v20 = vadd.f32 %v522_v18, %v167_v19 }
  0xb3   :  { %v425_v21 = vmul.f32 -1.442695, %v168_v20 }
  0xb5   :  { %525 = vpow2.f32 %v425_v21 }
  0xb8   :  { %v169_v22 = vpop.f32.mrf.mxu0 }
  0xbb   :  { %v526_v23 = vpop.eup %525 }
  0xbc   :  { %v174_v24 = vadd.f32 1.0, %v526_v23 }
  0xbe   :  { %527 = vrcp.f32 %v174_v24  ;;  %v186_v28 = vand.u32 2147483648, %v174_v24  ;;  %v184_v30 = vand.u32 2147483647, %v174_v24  ;;  %vm180_vm1 = vweird.f32 %v174_v24 }
  0xc0   :  { %v187_v32 = vor.u32 1.1754944e-38, %v186_v28  ;;  %vm185_vm3 = vcmp.eq.f32.partialorder %v184_v30, 8.507059e+37 }
  0xc4   :  { %v528_v25 = vpop.eup %527 }
  0xc5   :  { %v176_v26 = vmul.f32 %v528_v25, %v174_v24  ;;  %vm181_vm0 = vweird.f32 %v528_v25 }
  0xc6   :  { %vm182_vm2 = vmor %vm180_vm1, %vm181_vm0 }
  0xc7   :  { %v177_v27 = vsub.f32 1.0, %v176_v26 }
  0xc9   :  { %v178_v29 = vmul.f32 %v528_v25, %v177_v27 }
  0xcb   :  { %v179_v31 = vadd.f32 %v528_v25, %v178_v29 }
  0xcd   :  { %v183_v33 = vsel %vm182_vm2, %v528_v25, %v179_v31 }
  0xce   :  { %v188_v34 = vsel %vm185_vm3, %v187_v32, %v183_v33 }
  0xcf   :  { %v207_v35 = vpack.c.bf16 %v188_v34, %v188_v34 }
  0xd1   :  { %267 = vmatmul.bf16.vlgmr.msra.gmra.mxu1 %v207_v35 }
 0x14e   :  { %v268_v45 = vpop.f32.mrf.mxu1 }
 0x14f   :  { %v269_v46 = vadd.f32 %v523_v44, %v268_v45 }
 0x151   :  { %v458_v47 = vmul.f32 -1.442695, %v269_v46 }
 0x153   :  { %529 = vpow2.f32 %v458_v47 }
 0x156   :  { %v270_v48 = vpop.f32.mrf.mxu1 }
 0x159   :  { %v530_v49 = vpop.eup %529 }
 0x15a   :  { %v275_v50 = vadd.f32 1.0, %v530_v49 }
 0x15c   :  { %531 = vrcp.f32 %v275_v50  ;;  %v287_v54 = vand.u32 2147483648, %v275_v50  ;;  %v285_v56 = vand.u32 2147483647, %v275_v50  ;;  %vm281_vm5 = vweird.f32 %v275_v50 }
 0x15e   :  { %v288_v58 = vor.u32 1.1754944e-38, %v287_v54  ;;  %vm286_vm7 = vcmp.eq.f32.partialorder %v285_v56, 8.507059e+37 }
 0x162   :  { %v532_v51 = vpop.eup %531 }
 0x163   :  { %v277_v52 = vmul.f32 %v532_v51, %v275_v50  ;;  %vm282_vm4 = vweird.f32 %v532_v51 }
 0x164   :  { %vm283_vm6 = vmor %vm281_vm5, %vm282_vm4 }
 0x165   :  { %v278_v53 = vsub.f32 1.0, %v277_v52 }
 0x167   :  { %v279_v55 = vmul.f32 %v532_v51, %v278_v53 }
 0x169   :  { %v280_v57 = vadd.f32 %v532_v51, %v279_v55 }
 0x16b   :  { %v284_v59 = vsel %vm283_vm6, %v532_v51, %v280_v57 }
 0x16c   :  { %v289_v60 = vsel %vm286_vm7, %v288_v58, %v284_v59 }
 0x16d   :  { %v308_v61 = vpack.c.bf16 %v289_v60, %v289_v60 }
 0x16f   :  { %368 = vmatmul.bf16.vlgmr.msra.gmra.mxu2 %v308_v61 }
 0x1f2   :  { %v369_v63 = vpop.f32.mrf.mxu2 }
 0x1f3   :  { %v370_v0 = vadd.f32 %v524_v62, %v369_v63 }
 0x1f5   :  { %373 = vst [vmem:[#allocation10] sm:$0xff] %v370_v0 }
 0x1f6   :  { %384 = dma.vmem_to_hbm [thread:$0]  %s380_s24, 128, %s382_s27, [#allocation4]  }
 0x1fa   :  { %v371_v1 = vpop.f32.mrf.mxu2 }
 0x1fb   :  { %659 = dma.done.wait [#allocation4], 128  }
 0x1fc   :  { %660 = vsyncadd [#allocation4], 4294967168 }
 0x1fd   :  { %389 = vsyncpa [#allocation3], 1 }
 0x1fe   :  { %390 = vsyncpa [#allocation6], 1 }
 0x1ff   :  { %391 = vsyncpa [#allocation9], 1 }
 0x200   :  { %392 = vsyncpa [#allocation4], 1 }

</bundles_post_ra>
